<compile_context>
chip_gen: v7x
topology: tpu7x:2x2x1
jax: 0.10.0
libtpu: 0.0.40
codegen_flags: <defaults>
</compile_context>

<pallas_src>
import jax
import jax.numpy as jnp
from jax.experimental import pallas as pl
from jax.experimental.pallas import tpu as pltpu


_MEAN = 0.1307
_SIGMA = 0.3081
_INV_SIGMA = 1.0 / _SIGMA

_COLS = 1024          # lane-dense last dim, multiple of 128
_ROW_TILE = 512       # 512 * 1024 * 4 B = 2 MiB per tile per operand


def _normalization_kernel(x_ref, o_ref):
    # Pure elementwise: single fused sub + mul on vreg-resident constants.
    o_ref[...] = (x_ref[...] - _MEAN) * _INV_SIGMA


def normalization_forward(x):
    """x: NCHW array. Returns (x - 0.1307) / 0.3081, same shape/dtype."""
    orig_shape = x.shape
    total = x.size

    # Flatten and pad to a multiple of the lane-dense column width.
    padded_total = pl.cdiv(total, _COLS) * _COLS
    flat = jnp.ravel(x)
    if padded_total != total:
        flat = jnp.pad(flat, (0, padded_total - total))

    rows = padded_total // _COLS
    x2d = flat.reshape(rows, _COLS)

    # Tile rows: either the full row extent (small inputs) or a multiple-of-8
    # tile (satisfies the (8,128) BlockSpec rule; partial last block is fine).
    tr = rows if rows <= _ROW_TILE else _ROW_TILE
    grid = (pl.cdiv(rows, tr),)

    out2d = pl.pallas_call(
        _normalization_kernel,
        out_shape=jax.ShapeDtypeStruct((rows, _COLS), x.dtype),
        grid=grid,
        in_specs=[pl.BlockSpec((tr, _COLS), lambda i: (i, 0))],
        out_specs=pl.BlockSpec((tr, _COLS), lambda i: (i, 0)),
        compiler_params=pltpu.CompilerParams(
            dimension_semantics=("parallel",)),
    )(x2d)

    return out2d.reshape(-1)[:total].reshape(orig_shape)


if __name__ == "__main__":
    key = jax.random.PRNGKey(0)

    # Primary small NCHW input consistent with the module's 4-D broadcasting.
    x = jax.random.uniform(key, (2, 4, 16, 16), dtype=jnp.float32)
    out = jax.block_until_ready(normalization_forward(x))
    ref = (x - _MEAN) / _SIGMA
    assert out.shape == x.shape and out.dtype == x.dtype
    assert jnp.allclose(out, ref, atol=1e-5, rtol=1e-5)

    # Second check with a non-128-aligned spatial size (28x28, MNIST-like) to
    # exercise the pad/slice path.
    key2 = jax.random.PRNGKey(1)
    x2 = jax.random.uniform(key2, (2, 1, 28, 28), dtype=jnp.float32)
    out2 = jax.block_until_ready(normalization_forward(x2))
    ref2 = (x2 - _MEAN) / _SIGMA
    assert out2.shape == x2.shape
    assert jnp.allclose(out2, ref2, atol=1e-5, rtol=1e-5)

    print("KERNEL_OK")
</pallas_src>

<mosaic_0001>
module attributes {stable_mosaic.version = 11 : i64} {
  func.func @_normalization_kernel(%arg0: i32, %arg1: memref<2x1024xf32, #tpu.memory_space<vmem>>, %arg2: memref<2x1024xf32, #tpu.memory_space<vmem>>) attributes {dimension_semantics = [#tpu.dimension_semantics<parallel>], iteration_bounds = array<i64: 1>, scalar_prefetch = 0 : i64, scratch_operands = 0 : i64, tpu.core_type = #tpu.core_type<tc>, window_params = [{transform_indices = @transform_0, window_bounds = array<i64: 2, 1024>}, {transform_indices = @transform_1, window_bounds = array<i64: 2, 1024>}]} {
    %c0 = arith.constant 0 : index
    %c0_0 = arith.constant 0 : index
    %0 = vector.load %arg1[%c0, %c0_0] : memref<2x1024xf32, #tpu.memory_space<vmem>>, vector<2x1024xf32>
    %cst = arith.constant 1.307000e-01 : f32
    %1 = vector.broadcast %cst : f32 to vector<2x1024xf32>
    %2 = arith.subf %0, %1 : vector<2x1024xf32>
    %cst_1 = arith.constant 3.24569941 : f32
    %3 = vector.broadcast %cst_1 : f32 to vector<2x1024xf32>
    %4 = arith.mulf %2, %3 : vector<2x1024xf32>
    %c0_2 = arith.constant 0 : index
    %c0_3 = arith.constant 0 : index
    %5 = vector.load %arg2[%c0_2, %c0_3] : memref<2x1024xf32, #tpu.memory_space<vmem>>, vector<2x1024xf32>
    tpu.vector_store %arg2[%c0_2, %c0_3], %4 {strides = array<i32>} : memref<2x1024xf32, #tpu.memory_space<vmem>>, vector<2x1024xf32>,
    return
  }
  func.func @transform_0(%arg0: i32) -> (i32, i32) {
    %c0_i32 = arith.constant 0 : i32
    %c0_i32_0 = arith.constant 0 : i32
    return %arg0, %c0_i32 : i32, i32
  }
  func.func @transform_1(%arg0: i32) -> (i32, i32) {
    %c0_i32 = arith.constant 0 : i32
    %c0_i32_0 = arith.constant 0 : i32
    return %arg0, %c0_i32 : i32, i32
  }
}

</mosaic_0001>

<bundles_post_ra>
// kernel: tpu_custom_call.1
= control target key start
LH: loop header
LB: loop body
LE: loop exit
PB: predicated region body
PF: predicated region fallthrough
CT: control target
= control target key end

     0   :  { %6 = vsyncpa [#allocation3], 0  ;;  %s132_s0 = inlined_call_operand.hbm [shape: f32[2,1024], index: 0, kind: input, shape index: {}]   ;;  %s133_s1 = inlined_call_operand.hbm [shape: f32[2,1024], index: 1, kind: output, shape index: {}]  }
   0x1   :  { %7 = vsyncpa [#allocation4], 0  ;;  %s96_s6 = smov [#allocation2]   ;;  %s48_s10 = scalar_lea.hbm %s132_s0, 256 }
   0x2   :  { %s14_s7 = sshll.u32 %s96_s6, 4  ;;  %p49_p0 = scmp.ne.s32.totalorder %s132_s0, %s48_s10  ;;  %s15_s7 = int_to_ptr.vmem [resolvable:$true] %s14_s7 }
   0x3   :  { %p52_p1 = scmp.lt.u32.totalorder %s48_s10, %s132_s0 }
   0x5   :  { %p54_p2 = pnand %p52_p1, %p49_p0 }
   0x7   :  { %57 = shalt.err (!%p54_p2)
}
   0x8   :  { %s58_s15 = scalar_lea.vmem %s15_s7, 256  ;;  %p63_p4 = scmp.lt.s32.totalorder %s15_s7, %s15_s7 }
   0x9   :  { %p59_p3 = scmp.ne.s32.totalorder %s15_s7, %s58_s15  ;;  %p64_p5 = scmp.lt.s32.totalorder %s58_s15, %s58_s15 }
   0xb   :  { %p65_p6 = por %p64_p5, %p63_p4 }
   0xd   :  { %p66_p7 = pnand %p65_p6, %p59_p3 }
   0xf   :  { %69 = shalt.err (!%p66_p7)
}
  0x10   :  { %17 = dma.hbm_to_vmem [thread:$0]  %s132_s0, 256, %s15_s7, [#allocation3]  }
  0x11   :  { %92 = dma.done.wait [#allocation3], 256  }
  0x12   :  { %93 = vsyncadd [#allocation3], 4294967040  ;;  %v21_v0 = vld [vmem:[#allocation2] sm:$0xff]  ;;  %v22_v1 = vld [vmem:[#allocation2 + $0x8] sm:$0xff]  ;;  %s97_s18 = smov [#allocation5]  }
  0x13   :  { %s35_s19 = sshll.u32 %s97_s18, 4  ;;  %v44_v2 = vadd.f32 -0.1307, %v21_v0  ;;  %v45_v3 = vadd.f32 -0.1307, %v22_v1  ;;  %s36_s19 = int_to_ptr.vmem [resolvable:$true] %s35_s19 }
  0x14   :  { %s70_s20 = scalar_lea.vmem %s36_s19, 256  ;;  %p75_p9 = scmp.lt.s32.totalorder %s36_s19, %s36_s19 }
  0x15   :  { %v25_v4 = vmul.f32 3.2456994, %v44_v2  ;;  %v26_v5 = vmul.f32 3.2456994, %v45_v3  ;;  %p71_p8 = scmp.ne.s32.totalorder %s36_s19, %s70_s20  ;;  %p76_p10 = scmp.lt.s32.totalorder %s70_s20, %s70_s20 }
  0x17   :  { %27 = vst [vmem:[#allocation5] sm:$0xff] %v25_v4  ;;  %28 = vst [vmem:[#allocation5 + $0x8] sm:$0xff] %v26_v5  ;;  %p77_p11 = por %p76_p10, %p75_p9 }
  0x19   :  { %p78_p12 = pnand %p77_p11, %p71_p8 }
  0x1b   :  { %81 = shalt.err (!%p78_p12)
}
  0x1c   :  { %s82_s22 = scalar_lea.hbm %s133_s1, 256 }
  0x1d   :  { %p83_p13 = scmp.ne.s32.totalorder %s133_s1, %s82_s22  ;;  %p86_p0 = scmp.lt.u32.totalorder %s82_s22, %s133_s1 }
  0x1f   :  { %p88_p1 = pnand %p86_p0, %p83_p13 }
  0x21   :  { %91 = shalt.err (!%p88_p1)
}
  0x22   :  { %38 = dma.vmem_to_hbm [thread:$0]  %s36_s19, 256, %s133_s1, [#allocation4]  }
  0x23   :  { %94 = dma.done.wait [#allocation4], 256  }
  0x24   :  { %95 = vsyncadd [#allocation4], 4294967040 }
  0x25   :  { %42 = vsyncpa [#allocation3], 1 }
  0x26   :  { %43 = vsyncpa [#allocation4], 1 }

</bundles_post_ra>
